<compile_context>
chip_gen: v7x
topology: tpu7x:2x2x1
jax: 0.10.0
libtpu: 0.0.40
codegen_flags: <defaults>
</compile_context>

<pallas_src>
import functools
import math

import jax
import jax.numpy as jnp
from jax.experimental import pallas as pl
from jax.experimental.pallas import tpu as pltpu


# ----------------------------------------------------------------------------
# Exact GELU (erf form, like PyTorch's default F.gelu).
# erf is built from the Abramowitz-Stegun 7.1.26 rational approximation
# (max abs err 1.5e-7) using only mul/add/div/exp/select, all of which are
# guaranteed to lower in Mosaic (no reliance on an erf primitive).
# ----------------------------------------------------------------------------
def _erf(x):
    a1, a2, a3, a4, a5 = (0.254829592, -0.284496736, 1.421413741,
                          -1.453152027, 1.061405429)
    p = 0.3275911
    s = jnp.where(x < 0.0, -1.0, 1.0)
    ax = x * s
    t = 1.0 / (1.0 + p * ax)
    poly = ((((a5 * t + a4) * t + a3) * t + a2) * t + a1) * t
    return s * (1.0 - poly * jnp.exp(-ax * ax))


def _gelu_exact(x):
    return 0.5 * x * (1.0 + _erf(x * 0.7071067811865476))


# ----------------------------------------------------------------------------
# Fused MLP kernel: one token tile per grid step.
#   x_ref : (TM, H)  activation tile (compute dtype)
#   w1_ref: (H, D)   fc1 weight (VMEM-resident, single-buffered)
#   b1_ref: (1, D)   fc1 bias (f32)
#   w2_ref: (D, H)   fc2 weight (VMEM-resident, single-buffered)
#   b2_ref: (1, H)   fc2 bias (f32)
#   o_ref : (TM, H)  output tile
# mlp_dim (D) is processed in d_chunk-wide slices so only a (TM, d_chunk)
# hidden tile is ever live, instead of the full (TM, D) intermediate.
# ----------------------------------------------------------------------------
def _make_mlp_kernel(d_chunk, n_chunks):
    def kernel(x_ref, w1_ref, b1_ref, w2_ref, b2_ref, o_ref):
        x = x_ref[...]
        acc = None
        for c in range(n_chunks):          # static, fully unrolled
            lo = c * d_chunk
            hi = lo + d_chunk
            # fc1 chunk on the MXU, f32 accumulation; bias + GELU in f32.
            h = jnp.dot(x, w1_ref[:, lo:hi],
                        preferred_element_type=jnp.float32)
            h = _gelu_exact(h + b1_ref[:, lo:hi])
            # TODO(synk): nn.Dropout is identity in eval mode; train-mode
            # stochastic masking (pltpu.prng_*) is not reproduced here.
            # partial fc2 on the MXU, accumulated in f32.
            part = jnp.dot(h.astype(w2_ref.dtype), w2_ref[lo:hi, :],
                           preferred_element_type=jnp.float32)
            acc = part if acc is None else acc + part
        o_ref[...] = (acc + b2_ref[...]).astype(o_ref.dtype)

    return kernel


def mlp_forward(x, params, *, tile_m=256, d_chunk=512,
                compute_dtype=jnp.bfloat16, out_dtype=None):
    """x: (B, S, hidden) -> (B, S, hidden).  Fused fc1 -> GELU -> fc2."""
    B, S, H = x.shape
    D = params["w1"].shape[1]
    M = B * S
    out_dtype = x.dtype if out_dtype is None else out_dtype

    x2 = x.reshape(M, H).astype(compute_dtype)
    w1 = params["w1"].astype(compute_dtype)
    w2 = params["w2"].astype(compute_dtype)
    b1 = params["b1"].reshape(1, D).astype(jnp.float32)
    b2 = params["b2"].reshape(1, H).astype(jnp.float32)

    # ---- token-axis tiling. No host-side padding: the ragged last block is
    # handled by Pallas (OOB reads never mix across rows, OOB writes masked).
    m8 = ((M + 7) // 8) * 8
    tm = min(int(tile_m), m8)
    tm = ((tm + 7) // 8) * 8
    num_tiles = pl.cdiv(M, tm)
    # v7x has 2 TensorCores: avoid a single-step grid when it can be split.
    if num_tiles == 1 and tm >= 16:
        tm = ((tm // 2 + 7) // 8) * 8
        num_tiles = pl.cdiv(M, tm)

    # ---- mlp_dim chunking (largest divisor of D among preferred widths) ----
    dc = D
    for cand in (int(d_chunk), 512, 384, 256, 128):
        if 0 < cand <= D and D % cand == 0:
            dc = cand
            break
    n_chunks = D // dc

    # ---- explicit VMEM budget (weights single-buffered, tiles double-buffered)
    cbytes = jnp.dtype(compute_dtype).itemsize
    obytes = jnp.dtype(out_dtype).itemsize
    resident = 2 * H * D * cbytes + (D + H) * 4
    pipelined = 2 * tm * H * cbytes + 2 * tm * H * obytes
    scratch = tm * H * cbytes + tm * dc * (4 + cbytes) + tm * H * 4
    vmem_limit = int(1.3 * (resident + pipelined + scratch)) + (2 << 20)
    vmem_limit = max(32 << 20, min(vmem_limit, 100 << 20))

    def resident_spec(shape):
        # Constant index_map -> fetched once; Buffered(1) avoids wasting VMEM
        # on a second buffer that would never be used.
        return pl.BlockSpec(shape, lambda i: (0, 0),
                            pipeline_mode=pl.Buffered(1))

    cost = pl.CostEstimate(
        flops=4 * M * H * D,
        transcendentals=M * D,
        bytes_accessed=M * H * (cbytes + obytes) + 2 * H * D * cbytes
        + (D + H) * 4,
    )

    out = pl.pallas_call(
        _make_mlp_kernel(dc, n_chunks),
        out_shape=jax.ShapeDtypeStruct((M, H), out_dtype),
        grid=(num_tiles,),
        in_specs=[
            pl.BlockSpec((tm, H), lambda i: (i, 0)),   # token tile (pipelined)
            resident_spec((H, D)),                     # w1
            resident_spec((1, D)),                     # b1
            resident_spec((D, H)),                     # w2
            resident_spec((1, H)),                     # b2
        ],
        out_specs=pl.BlockSpec((tm, H), lambda i: (i, 0)),
        compiler_params=pltpu.CompilerParams(
            dimension_semantics=("parallel",),
            vmem_limit_bytes=vmem_limit),
        cost_estimate=cost,
    )(x2, w1, b1, w2, b2)

    return out.reshape(B, S, H)


# ----------------------------------------------------------------------------
# Parameter init matching Mlp._init_weights:
#   xavier_uniform_ for fc1/fc2 weights, normal(std=1e-6) for biases.
# Weights stored as (in_features, out_features) so the kernel does x @ w,
# equivalent to PyTorch's x @ W.T with W of shape (out, in).
# ----------------------------------------------------------------------------
def init_params(key, hidden_size, mlp_dim):
    k1, k2, k3, k4 = jax.random.split(key, 4)
    lim = math.sqrt(6.0 / (hidden_size + mlp_dim))  # same fan sum for both
    w1 = jax.random.uniform(k1, (hidden_size, mlp_dim), jnp.float32, -lim, lim)
    w2 = jax.random.uniform(k2, (mlp_dim, hidden_size), jnp.float32, -lim, lim)
    b1 = jax.random.normal(k3, (mlp_dim,), jnp.float32) * 1e-6
    b2 = jax.random.normal(k4, (hidden_size,), jnp.float32) * 1e-6
    return {"w1": w1, "b1": b1, "w2": w2, "b2": b2}


# Pure-JAX reference (f32, exact erf GELU — same as PyTorch F.gelu default).
def mlp_ref(x, params):
    h = jnp.einsum("bsh,hd->bsd", x, params["w1"]) + params["b1"]
    h = jax.nn.gelu(h, approximate=False)
    return jnp.einsum("bsd,dh->bsh", h, params["w2"]) + params["b2"]


if __name__ == "__main__":
    key = jax.random.PRNGKey(0)
    kp, kx1, kx2 = jax.random.split(key, 3)

    # Small ViT-like config: hidden=128, mlp_dim=4*hidden.
    B, S, HIDDEN, MLP_DIM = 2, 16, 128, 512
    params = init_params(kp, HIDDEN, MLP_DIM)
    x = jax.random.normal(kx1, (B, S, HIDDEN), jnp.float32)

    # bf16 compute path (the production path).
    fwd_bf16 = jax.jit(functools.partial(mlp_forward,
                                         compute_dtype=jnp.bfloat16))
    out = fwd_bf16(x, params)
    jax.block_until_ready(out)
    assert out.shape == (B, S, HIDDEN)
    err = float(jnp.max(jnp.abs(out - mlp_ref(x, params))))
    assert err < 3e-2, f"bf16 path: max abs error vs reference: {err}"

    # f32 compute path on a ragged token count (M=50, not a multiple of the
    # tile) to exercise the masked partial-tile writeback.
    x_rag = jax.random.normal(kx2, (1, 50, HIDDEN), jnp.float32)
    fwd_f32 = jax.jit(functools.partial(mlp_forward,
                                        compute_dtype=jnp.float32))
    out2 = fwd_f32(x_rag, params)
    jax.block_until_ready(out2)
    assert out2.shape == (1, 50, HIDDEN)
    err2 = float(jnp.max(jnp.abs(out2 - mlp_ref(x_rag, params))))
    assert err2 < 2e-2, f"f32 path: max abs error vs reference: {err2}"

    print("KERNEL_OK")
</pallas_src>

<mosaic_0001>
module attributes {stable_mosaic.version = 11 : i64} {
  func.func @kernel(%arg0: i32, %arg1: memref<16x128xbf16, #tpu.memory_space<vmem>>, %arg2: memref<128x512xbf16, #tpu.memory_space<vmem>>, %arg3: memref<1x512xf32, #tpu.memory_space<vmem>>, %arg4: memref<512x128xbf16, #tpu.memory_space<vmem>>, %arg5: memref<1x128xf32, #tpu.memory_space<vmem>>, %arg6: memref<16x128xf32, #tpu.memory_space<vmem>>) attributes {dimension_semantics = [#tpu.dimension_semantics<parallel>], iteration_bounds = array<i64: 2>, scalar_prefetch = 0 : i64, scratch_operands = 0 : i64, tpu.core_type = #tpu.core_type<tc>, window_params = [{transform_indices = @transform_0, window_bounds = array<i64: 16, 128>}, {pipeline_mode = #tpu.pipeline_mode<synchronous>, transform_indices = @transform_1, window_bounds = array<i64: 128, 512>}, {pipeline_mode = #tpu.pipeline_mode<synchronous>, transform_indices = @transform_2, window_bounds = array<i64: 1, 512>}, {pipeline_mode = #tpu.pipeline_mode<synchronous>, transform_indices = @transform_3, window_bounds = array<i64: 512, 128>}, {pipeline_mode = #tpu.pipeline_mode<synchronous>, transform_indices = @transform_4, window_bounds = array<i64: 1, 128>}, {transform_indices = @transform_5, window_bounds = array<i64: 16, 128>}]} {
    %c0 = arith.constant 0 : index
    %c0_0 = arith.constant 0 : index
    %0 = vector.load %arg1[%c0, %c0_0] : memref<16x128xbf16, #tpu.memory_space<vmem>>, vector<16x128xbf16>
    %c0_1 = arith.constant 0 : index
    %c0_2 = arith.constant 0 : index
    %1 = vector.load %arg2[%c0_1, %c0_2] : memref<128x512xbf16, #tpu.memory_space<vmem>>, vector<128x512xbf16>
    %cst = arith.constant dense<0.000000e+00> : vector<16x512xf32>
    %2 = tpu.matmul %0, %1, %cst {dimension_numbers = #tpu.dot_dimension_numbers<[1], [0], [0], [1], [0, 0, 1, 1], [], []>} : vector<16x128xbf16>, vector<128x512xbf16>, vector<16x512xf32> -> vector<16x512xf32>
    %c0_3 = arith.constant 0 : index
    %c0_4 = arith.constant 0 : index
    %3 = vector.load %arg3[%c0_3, %c0_4] : memref<1x512xf32, #tpu.memory_space<vmem>>, vector<1x512xf32>
    %4 = vector.broadcast %3 : vector<1x512xf32> to vector<16x512xf32>
    %5 = arith.addf %2, %4 : vector<16x512xf32>
    %cst_5 = arith.constant 5.000000e-01 : f32
    %6 = vector.broadcast %cst_5 : f32 to vector<16x512xf32>
    %7 = arith.mulf %6, %5 : vector<16x512xf32>
    %cst_6 = arith.constant 0.707106769 : f32
    %8 = vector.broadcast %cst_6 : f32 to vector<16x512xf32>
    %9 = arith.mulf %5, %8 : vector<16x512xf32>
    %cst_7 = arith.constant 0.000000e+00 : f32
    %10 = vector.broadcast %cst_7 : f32 to vector<16x512xf32>
    %11 = arith.cmpf olt, %9, %10 : vector<16x512xf32>
    %cst_8 = arith.constant -1.000000e+00 : f32
    %cst_9 = arith.constant 1.000000e+00 : f32
    %12 = vector.broadcast %cst_8 : f32 to vector<16x512xf32>
    %13 = vector.broadcast %cst_9 : f32 to vector<16x512xf32>
    %14 = arith.select %11, %12, %13 : vector<16x512xi1>, vector<16x512xf32>
    %15 = arith.mulf %9, %14 : vector<16x512xf32>
    %cst_10 = arith.constant 0.327591091 : f32
    %16 = vector.broadcast %cst_10 : f32 to vector<16x512xf32>
    %17 = arith.mulf %16, %15 : vector<16x512xf32>
    %cst_11 = arith.constant 1.000000e+00 : f32
    %18 = vector.broadcast %cst_11 : f32 to vector<16x512xf32>
    %19 = arith.addf %18, %17 : vector<16x512xf32>
    %cst_12 = arith.constant 1.000000e+00 : f32
    %20 = vector.broadcast %cst_12 : f32 to vector<16x512xf32>
    %21 = arith.divf %20, %19 : vector<16x512xf32>
    %cst_13 = arith.constant 1.06140542 : f32
    %22 = vector.broadcast %cst_13 : f32 to vector<16x512xf32>
    %23 = arith.mulf %22, %21 : vector<16x512xf32>
    %cst_14 = arith.constant -1.45315206 : f32
    %24 = vector.broadcast %cst_14 : f32 to vector<16x512xf32>
    %25 = arith.addf %23, %24 : vector<16x512xf32>
    %26 = arith.mulf %25, %21 : vector<16x512xf32>
    %cst_15 = arith.constant 1.42141378 : f32
    %27 = vector.broadcast %cst_15 : f32 to vector<16x512xf32>
    %28 = arith.addf %26, %27 : vector<16x512xf32>
    %29 = arith.mulf %28, %21 : vector<16x512xf32>
    %cst_16 = arith.constant -0.284496725 : f32
    %30 = vector.broadcast %cst_16 : f32 to vector<16x512xf32>
    %31 = arith.addf %29, %30 : vector<16x512xf32>
    %32 = arith.mulf %31, %21 : vector<16x512xf32>
    %cst_17 = arith.constant 0.254829586 : f32
    %33 = vector.broadcast %cst_17 : f32 to vector<16x512xf32>
    %34 = arith.addf %32, %33 : vector<16x512xf32>
    %35 = arith.mulf %34, %21 : vector<16x512xf32>
    %cst_18 = arith.constant 0.000000e+00 : f32
    %36 = vector.broadcast %cst_18 : f32 to vector<16x512xf32>
    %37 = arith.subf %36, %15 : vector<16x512xf32>
    %38 = arith.mulf %37, %15 : vector<16x512xf32>
    %39 = math.exp %38 : vector<16x512xf32>
    %40 = arith.mulf %35, %39 : vector<16x512xf32>
    %cst_19 = arith.constant 1.000000e+00 : f32
    %41 = vector.broadcast %cst_19 : f32 to vector<16x512xf32>
    %42 = arith.subf %41, %40 : vector<16x512xf32>
    %43 = arith.mulf %14, %42 : vector<16x512xf32>
    %cst_20 = arith.constant 1.000000e+00 : f32
    %44 = vector.broadcast %cst_20 : f32 to vector<16x512xf32>
    %45 = arith.addf %44, %43 : vector<16x512xf32>
    %46 = arith.mulf %7, %45 : vector<16x512xf32>
    %47 = arith.truncf %46 : vector<16x512xf32> to vector<16x512xbf16>
    %c0_21 = arith.constant 0 : index
    %c0_22 = arith.constant 0 : index
    %48 = vector.load %arg4[%c0_21, %c0_22] : memref<512x128xbf16, #tpu.memory_space<vmem>>, vector<512x128xbf16>
    %cst_23 = arith.constant dense<0.000000e+00> : vector<16x128xf32>
    %49 = tpu.matmul %47, %48, %cst_23 {dimension_numbers = #tpu.dot_dimension_numbers<[1], [0], [0], [1], [0, 0, 1, 1], [], []>} : vector<16x512xbf16>, vector<512x128xbf16>, vector<16x128xf32> -> vector<16x128xf32>
    %c0_24 = arith.constant 0 : index
    %c0_25 = arith.constant 0 : index
    %50 = vector.load %arg5[%c0_24, %c0_25] : memref<1x128xf32, #tpu.memory_space<vmem>>, vector<1x128xf32>
    %51 = vector.broadcast %50 : vector<1x128xf32> to vector<16x128xf32>
    %52 = arith.addf %49, %51 : vector<16x128xf32>
    %c0_26 = arith.constant 0 : index
    %c0_27 = arith.constant 0 : index
    %53 = vector.load %arg6[%c0_26, %c0_27] : memref<16x128xf32, #tpu.memory_space<vmem>>, vector<16x128xf32>
    tpu.vector_store %arg6[%c0_26, %c0_27], %52 {strides = array<i32>} : memref<16x128xf32, #tpu.memory_space<vmem>>, vector<16x128xf32>,
    return
  }
  func.func @transform_0(%arg0: i32) -> (i32, i32) {
    %c0_i32 = arith.constant 0 : i32
    %c0_i32_0 = arith.constant 0 : i32
    return %arg0, %c0_i32 : i32, i32
  }
  func.func @transform_1(%arg0: i32) -> (i32, i32) {
    %c0_i32 = arith.constant 0 : i32
    %c0_i32_0 = arith.constant 0 : i32
    %c0_i32_1 = arith.constant 0 : i32
    return %c0_i32, %c0_i32_0 : i32, i32
  }
  func.func @transform_2(%arg0: i32) -> (i32, i32) {
    %c0_i32 = arith.constant 0 : i32
    %c0_i32_0 = arith.constant 0 : i32
    %c0_i32_1 = arith.constant 0 : i32
    return %c0_i32, %c0_i32_0 : i32, i32
  }
  func.func @transform_3(%arg0: i32) -> (i32, i32) {
    %c0_i32 = arith.constant 0 : i32
    %c0_i32_0 = arith.constant 0 : i32
    %c0_i32_1 = arith.constant 0 : i32
    return %c0_i32, %c0_i32_0 : i32, i32
  }
  func.func @transform_4(%arg0: i32) -> (i32, i32) {
    %c0_i32 = arith.constant 0 : i32
    %c0_i32_0 = arith.constant 0 : i32
    %c0_i32_1 = arith.constant 0 : i32
    return %c0_i32, %c0_i32_0 : i32, i32
  }
  func.func @transform_5(%arg0: i32) -> (i32, i32) {
    %c0_i32 = arith.constant 0 : i32
    %c0_i32_0 = arith.constant 0 : i32
    return %arg0, %c0_i32 : i32, i32
  }
}

</mosaic_0001>

<bundles_post_ra>
// kernel: mlp_forward.1
= control target key start
LH: loop header
LB: loop body
LE: loop exit
PB: predicated region body
PF: predicated region fallthrough
CT: control target
= control target key end

     0   :  { %10 = vsyncpa [#allocation3], 0  ;;  %s1991_s0 = inlined_call_operand.vmem [shape: bf16[32,128], index: 0, kind: input, shape index: {}]   ;;  %s1992_s1 = inlined_call_operand.vmem [shape: bf16[128,512], index: 1, kind: input, shape index: {}]   ;;  %s1993_s2 = inlined_call_operand.vmem [shape: f32[1,512], index: 2, kind: input, shape index: {}]   ;;  %s1994_s3 = inlined_call_operand.vmem [shape: bf16[512,128], index: 3, kind: input, shape index: {}]   ;;  %s1995_s4 = inlined_call_operand.vmem [shape: f32[1,128], index: 4, kind: input, shape index: {}]   ;;  %s1996_s5 = inlined_call_operand.hbm [shape: f32[32,128], index: 5, kind: output, shape index: {}]  }
   0x1   :  { %12 = vsyncpa [#allocation3 + $0x1], 0  ;;  %s1556_s18 = smov 0   ;;  %s1558_s19 = smov 0  }
   0x2   :  { %s1560_s20 = smov 0   ;;  %s1562_s21 = smov 0  }
   0x3 LB: > { %s1577_s22 = sadd.s32 4294967295, %s1519_s21   ;;  %s1178_s23 = sadd.s32 4294967294, %s1519_s21   ;;  %s1519_s21 = sphi %s1562_s21, %s2002_s21   ;;  %s1515_s20 = sphi %s1560_s20, %s2001_s20   ;;  %s1511_s19 = sphi %s1558_s19, %s2000_s19   ;;  %s1507_s18 = sphi %s1556_s18, %s1999_s18  }
   0x4   : > { %s1581_s24 = sadd.s32 1, %s1519_s21   ;;  %s135_s25 = sadd.s32 1, %s1515_s20 }
   0x5   : > { %s132_s26 = ssub.s32 %s1519_s21, %s1581_s24  ;;  %p145_p0 = scmp.ne.s32.totalorder %s1515_s20, %s1511_s19 }
   0x6   : > { %p133_p1 = scmp.eq.s32.totalorder %s132_s26, 0  ;;  %p146_p2 = scmp.eq.s32.totalorder %s1577_s22, 1 }
   0x7   : > { %p151_p3 = scmp.ne.s32.totalorder %s1511_s19, %s1507_s18  ;;  %p152_p4 = scmp.eq.s32.totalorder %s1178_s23, 1 }
   0x8   : > { %s1592_s27 = scalar_select %p133_p1, %s1515_s20, %s135_s25  }
   0x9   : > { %p1594_p5 = por %p146_p2, %p145_p0  ;;  %p1598_p6 = por %p152_p4, %p151_p3 }
   0xa   : > { %p1181_p7 = scmp.ge.s32.totalorder %s1519_s21, 1  ;;  %p191_p8 = scmp.lt.s32.totalorder %s1519_s21, 3 }
   0xc   : > { %p192_p9 = pnand %p1181_p7, %p191_p8 }
   0xd   : > { %v1344_v0 = vld [vmem:[%s1992_s1 + $0x4] ss:$16 sps:$4 sm:$0xff] (!%p192_p9)   ;;  %v1346_v1 = vld [vmem:[%s1992_s1 + $0xc] ss:$16 sps:$4 sm:$0xff] (!%p192_p9)   ;;  %v1521_v2 = vmov (!%p192_p9), 0   ;;  %s1183_s7 = sshll.u32 (!%p192_p9), %s1577_s22, 1 }
   0xe   : > { %195 = sbr.rel (%p192_p9) target bundleno = 565 (0x235), region = 40  ;;  %481 = vmatprep.mubr.bf16.mxu0 (!%p192_p9), %v1521_v2  ;;  %524 = vmatprep.mubr.bf16.mxu1 (!%p192_p9), %v1521_v2  ;;  %v1348_v3 = vld [vmem:[%s1992_s1] ss:$16 sps:$4 sm:$0xff] (!%p192_p9)   ;;  %v1349_v4 = vld [vmem:[%s1992_s1 + $0x8] ss:$16 sps:$4 sm:$0xff] (!%p192_p9)   ;;  %p220_p10 = scmp.lt.s32.totalorder (!%p192_p9), %s1183_s7, 3  ;;  %v263_v2 = vlaneseq (!%p192_p9) }
   0xf   : > { %449 = vmatprep.subr.bf16.mxu0 (!%p192_p9), %v1344_v0  ;;  %492 = vmatprep.subr.bf16.mxu1 (!%p192_p9), %v1346_v1  ;;  %v1350_v5 = vld [vmem:[%s1992_s1 + $0x24] ss:$16 sps:$4 sm:$0xff] (!%p192_p9)   ;;  %v1352_v6 = vld [vmem:[%s1992_s1 + $0x2c] ss:$16 sps:$4 sm:$0xff] (!%p192_p9)   ;;  %v1354_v7 = vld [vmem:[%s1992_s1 + $0x20] ss:$16 sps:$4 sm:$0xff] (!%p192_p9)  }
  0x10   : > { %450 = vmatpush1.bf16.msra.mxu0 (!%p192_p9), %v1348_v3  ;;  %493 = vmatpush1.bf16.msra.mxu1 (!%p192_p9), %v1349_v4  ;;  %v1355_v8 = vld [vmem:[%s1992_s1 + $0x28] ss:$16 sps:$4 sm:$0xff] (!%p192_p9)   ;;  %v1356_v9 = vld [vmem:[%s1992_s1 + $0x44] ss:$16 sps:$4 sm:$0xff] (!%p192_p9)   ;;  %v1358_v10 = vld [vmem:[%s1992_s1 + $0x4c] ss:$16 sps:$4 sm:$0xff] (!%p192_p9)  }
  0x11   : > { %451 = vmatprep.subr.bf16.mxu0 (!%p192_p9), %v1350_v5  ;;  %494 = vmatprep.subr.bf16.mxu1 (!%p192_p9), %v1352_v6  ;;  %v1360_v11 = vld [vmem:[%s1992_s1 + $0x40] ss:$16 sps:$4 sm:$0xff] (!%p192_p9)   ;;  %v1361_v12 = vld [vmem:[%s1992_s1 + $0x48] ss:$16 sps:$4 sm:$0xff] (!%p192_p9)   ;;  %v1362_v13 = vld [vmem:[%s1992_s1 + $0x64] ss:$16 sps:$4 sm:$0xff] (!%p192_p9)  }
  0x12   : > { %v1364_v14 = vld [vmem:[%s1992_s1 + $0x6c] ss:$16 sps:$4 sm:$0xff] (!%p192_p9)   ;;  %v1366_v15 = vld [vmem:[%s1992_s1 + $0x60] ss:$16 sps:$4 sm:$0xff] (!%p192_p9)   ;;  %v1367_v16 = vld [vmem:[%s1992_s1 + $0x68] ss:$16 sps:$4 sm:$0xff] (!%p192_p9)  }
  0x13   : > { %v1368_v17 = vld [vmem:[%s1992_s1 + $0x84] ss:$16 sps:$4 sm:$0xff] (!%p192_p9)   ;;  %v1370_v18 = vld [vmem:[%s1992_s1 + $0x8c] ss:$16 sps:$4 sm:$0xff] (!%p192_p9)   ;;  %v1372_v19 = vld [vmem:[%s1992_s1 + $0x80] ss:$16 sps:$4 sm:$0xff] (!%p192_p9)  }
  0x14   : > { %452 = vmatpush1.bf16.msra.mxu0 (!%p192_p9), %v1354_v7  ;;  %495 = vmatpush1.bf16.msra.mxu1 (!%p192_p9), %v1355_v8  ;;  %v1373_v20 = vld [vmem:[%s1992_s1 + $0x88] ss:$16 sps:$4 sm:$0xff] (!%p192_p9)   ;;  %v1374_v21 = vld [vmem:[%s1992_s1 + $0xa4] ss:$16 sps:$4 sm:$0xff] (!%p192_p9)   ;;  %v1376_v22 = vld [vmem:[%s1992_s1 + $0xac] ss:$16 sps:$4 sm:$0xff] (!%p192_p9)  }
  0x15   : > { %453 = vmatprep.subr.bf16.mxu0 %v1356_v9  ;;  %496 = vmatprep.subr.bf16.mxu1 %v1358_v10  ;;  %s2004_s7 = smov (!%p220_p10, %s1183_s7), 3  ;;  %v1378_v23 = vld [vmem:[%s1992_s1 + $0xa0] ss:$16 sps:$4 sm:$0xff]   ;;  %v1379_v24 = vld [vmem:[%s1992_s1 + $0xa8] ss:$16 sps:$4 sm:$0xff]   ;;  %v264_v3 = vshrl.u32 %v263_v2, 7 }
  0x16   : > { %s1184_s25 = sshll.u32 %s2004_s7, 2  ;;  %v1380_v25 = vld [vmem:[%s1992_s1 + $0xc4] ss:$16 sps:$4 sm:$0xff]   ;;  %v1382_v26 = vld [vmem:[%s1992_s1 + $0xcc] ss:$16 sps:$4 sm:$0xff]   ;;  %s216_s14 = sand.u32 1, %s1511_s19  }
  0x17   : > { %s223_s13 = scalar_lea.vmem %s1991_s0, %s1184_s25  ;;  %v1384_v27 = vld [vmem:[%s1992_s1 + $0xc0] ss:$16 sps:$4 sm:$0xff]   ;;  %v1385_v28 = vld [vmem:[%s1992_s1 + $0xc8] ss:$16 sps:$4 sm:$0xff]   ;;  %v1386_v29 = vld [vmem:[%s1992_s1 + $0xe4] ss:$16 sps:$4 sm:$0xff]  }
  0x18   : > { %454 = vmatpush1.bf16.msra.mxu0 %v1360_v11  ;;  %497 = vmatpush1.bf16.msra.mxu1 %v1361_v12  ;;  %v1388_v30 = vld [vmem:[%s1992_s1 + $0xec] ss:$16 sps:$4 sm:$0xff]   ;;  %v1390_v31 = vld [vmem:[%s1992_s1 + $0xe0] ss:$16 sps:$4 sm:$0xff]   ;;  %v1391_v32 = vld [vmem:[%s1992_s1 + $0xe8] ss:$16 sps:$4 sm:$0xff]  }
  0x19   : > { %455 = vmatprep.subr.bf16.mxu0 %v1362_v13  ;;  %498 = vmatprep.subr.bf16.mxu1 %v1364_v14  ;;  %v1392_v33 = vld [vmem:[%s223_s13] sm:$0xff]   ;;  %v1397_v38 = vld [vmem:[%s1994_s3 + $0x48] sm:$0xff]   ;;  %v1401_v42 = vld [vmem:[%s1994_s3 + $0x50] sm:$0xff]   ;;  %v265_v4 = vsub.s32 0, %v264_v3  ;;  %v273_v5 = vsub.s32 2, %v264_v3  ;;  %v269_v7 = vsub.s32 1, %v264_v3 }
  0x1a   : > { %v1393_v34 = vld [vmem:[%s1994_s3 + $0x40] sm:$0xff]   ;;  %v1398_v39 = vld [vmem:[%s1994_s3 + $0xc8] sm:$0xff]   ;;  %v1402_v43 = vld [vmem:[%s1994_s3 + $0xd0] sm:$0xff]   ;;  %v277_v8 = vsub.s32 3, %v264_v3  ;;  %s1182_s15 = sshll.u32 %s216_s14, 4  ;;  %s1256_s13 = sshll.u32 %s1577_s22, 8 }
  0x1b   : > { %v1394_v35 = vld [vmem:[%s1994_s3 + $0xc0] sm:$0xff]   ;;  %v1399_v40 = vld [vmem:[%s1994_s3 + $0x8] sm:$0xff]   ;;  %v1403_v44 = vld [vmem:[%s1994_s3 + $0x10] sm:$0xff]   ;;  %s218_s23 = scalar_lea.vmem [#allocation2], %s1182_s15  ;;  %s1948_s25 = scalar_lea.hbm %s1996_s5, %s1256_s13 }
  0x1c   : > { %456 = vmatpush1.bf16.msra.mxu0 %v1366_v15  ;;  %499 = vmatpush1.bf16.msra.mxu1 %v1367_v16  ;;  %v1395_v36 = vld [vmem:[%s1994_s3] sm:$0xff]   ;;  %v1400_v41 = vld [vmem:[%s1994_s3 + $0x88] sm:$0xff]   ;;  %v1404_v45 = vld [vmem:[%s1994_s3 + $0x90] sm:$0xff]   ;;  %s1116_s26 = sshll.u32 %s218_s23, 4  ;;  %s1950_s8 = scalar_lea.sflag [#allocation3], %s216_s14  ;;  %s1943_s26 = int_to_ptr.vmem [resolvable:$true] %s1116_s26 }
  0x1d   : > { %457 = vmatprep.subr.bf16.mxu0 %v1368_v17  ;;  %500 = vmatprep.subr.bf16.mxu1 %v1370_v18  ;;  %v1396_v37 = vld [vmem:[%s1994_s3 + $0x80] sm:$0xff]   ;;  %v1405_v46 = vld [vmem:[%s1994_s3 + $0x58] sm:$0xff]   ;;  %v1413_v54 = vld [vmem:[%s1994_s3 + $0x68] sm:$0xff]   ;;  %s1457_s9 = scalar_lea.vmem %s1943_s26, 256  ;;  %s1523_s22 = smov [#allocation2]  }
  0x1e   : > { %v1406_v47 = vld [vmem:[%s1994_s3 + $0xd8] sm:$0xff]   ;;  %v1409_v50 = vld [vmem:[%s1994_s3 + $0x60] sm:$0xff]   ;;  %v1414_v55 = vld [vmem:[%s1994_s3 + $0xe8] sm:$0xff]   ;;  %p1458_p11 = scmp.ne.s32.totalorder %s1943_s26, %s1457_s9  ;;  %s1461_s10 = sshll.u32 %s1523_s22, 4  ;;  %s1462_s10 = int_to_ptr.vmem [resolvable:$false] %s1461_s10 }
  0x1f   : > { %v1407_v48 = vld [vmem:[%s1994_s3 + $0x18] sm:$0xff]   ;;  %v1410_v51 = vld [vmem:[%s1994_s3 + $0xe0] sm:$0xff]   ;;  %v1415_v56 = vld [vmem:[%s1994_s3 + $0x28] sm:$0xff]   ;;  %s1463_s11 = scalar_lea.vmem %s1462_s10, 512  ;;  %p1464_p0 = scmp.lt.s32.totalorder %s1943_s26, %s1462_s10 }
  0x20   : > { %458 = vmatpush1.bf16.msra.mxu0 %v1372_v19  ;;  %501 = vmatpush1.bf16.msra.mxu1 %v1373_v20  ;;  %v1408_v49 = vld [vmem:[%s1994_s3 + $0x98] sm:$0xff]   ;;  %v1411_v52 = vld [vmem:[%s1994_s3 + $0x20] sm:$0xff]   ;;  %v1416_v57 = vld [vmem:[%s1994_s3 + $0xa8] sm:$0xff]   ;;  %p1459_p12 = pnand %p1458_p11, %p1594_p5  ;;  %p1465_p1 = scmp.lt.s32.totalorder %s1463_s11, %s1457_s9 }
  0x21   : > { %459 = vmatprep.subr.bf16.mxu0 %v1374_v21  ;;  %502 = vmatprep.subr.bf16.mxu1 %v1376_v22  ;;  %v1412_v53 = vld [vmem:[%s1994_s3 + $0xa0] sm:$0xff]   ;;  %v1417_v58 = vld [vmem:[%s1994_s3 + $0x70] sm:$0xff]   ;;  %v1421_v62 = vld [vmem:[%s1994_s3 + $0x78] sm:$0xff]  }
  0x22   : > { %v1418_v59 = vld [vmem:[%s1994_s3 + $0xf0] sm:$0xff]   ;;  %v1422_v63 = vld [vmem:[%s1994_s3 + $0xf8] sm:$0xff]   ;;  %v261_v6 = vld [vmem:[%s1993_s2] sm:$0xf]  ;;  %p1460_p13 = pneg %p1459_p12  ;;  %p1466_p2 = por %p1465_p1, %p1464_p0 }
  0x23   : > { %v1419_v60 = vld [vmem:[%s1994_s3 + $0x30] sm:$0xff]   ;;  %v1423_v0 = vld [vmem:[%s1994_s3 + $0x38] sm:$0xff]   ;;  %v266_v9 = vrot.slane %v261_v6, %v265_v4  ;;  %v274_v10 = vrot.slane %v261_v6, %v273_v5  ;;  %v270_v11 = vrot.slane %v261_v6, %v269_v7  ;;  %v278_v12 = vrot.slane %v261_v6, %v277_v8 }
  0x24   : > { %460 = vmatpush1.bf16.msra.mxu0 %v1378_v23  ;;  %503 = vmatpush1.bf16.msra.mxu1 %v1379_v24  ;;  %v1420_v61 = vld [vmem:[%s1994_s3 + $0xb0] sm:$0xff]   ;;  %v1424_v1 = vld [vmem:[%s1994_s3 + $0xb8] sm:$0xff]   ;;  %p1467_p3 = pnand %p1466_p2, %p1460_p13 }
  0x25   : > { %461 = vmatprep.subr.bf16.mxu0 %v1380_v25  ;;  %504 = vmatprep.subr.bf16.mxu1 %v1382_v26 }
  0x28   : > { %462 = vmatpush1.bf16.msra.mxu0 %v1384_v27  ;;  %505 = vmatpush1.bf16.msra.mxu1 %v1385_v28 }
  0x29   : > { %463 = vmatprep.subr.bf16.mxu0 %v1386_v29  ;;  %506 = vmatprep.subr.bf16.mxu1 %v1388_v30  ;;  %v1522_v30 = vmov 1.0  }
  0x2c   : > { %464 = vmatpush1.bf16.msra.mxu0 %v1390_v31  ;;  %507 = vmatpush1.bf16.msra.mxu1 %v1391_v32 }
  0x2d   : > { %1257 = vmatprep.subr.bf16.mxu0 %v1393_v34  ;;  %1279 = vmatprep.subr.bf16.mxu1 %v1394_v35 }
  0x2f   : > { %482 = vmatmul.mubr.bf16.vlgmr.msra.gmra.mrb[0].mxu0 %v1392_v33  ;;  %525 = vmatmul.mubr.bf16.vlgmr.msra.gmra.mrb[0].mxu1 %v1392_v33 }
  0x30   : > { %1258 = vmatpush3.bf16.msra.mxu0 %v1395_v36  ;;  %1280 = vmatpush3.bf16.msra.mxu1 %v1396_v37 }
  0x31   : > { %1259 = vmatprep.subr.bf16.mxu0 %v1397_v38  ;;  %1281 = vmatprep.subr.bf16.mxu1 %v1398_v39 }
  0x34   : > { %1260 = vmatpush3.bf16.msra.mxu0 %v1399_v40  ;;  %1282 = vmatpush3.bf16.msra.mxu1 %v1400_v41 }
  0x35   : > { %1261 = vmatprep.subr.bf16.mxu0 %v1401_v42  ;;  %1283 = vmatprep.subr.bf16.mxu1 %v1402_v43 }
  0x38   : > { %1262 = vmatpush3.bf16.msra.mxu0 %v1403_v44  ;;  %1284 = vmatpush3.bf16.msra.mxu1 %v1404_v45 }
  0x39   : > { %1263 = vmatprep.subr.bf16.mxu0 %v1405_v46  ;;  %1285 = vmatprep.subr.bf16.mxu1 %v1406_v47 }
  0x3c   : > { %1264 = vmatpush3.bf16.msra.mxu0 %v1407_v48  ;;  %1286 = vmatpush3.bf16.msra.mxu1 %v1408_v49 }
  0x3d   : > { %1265 = vmatprep.subr.bf16.mxu0 %v1409_v50  ;;  %1287 = vmatprep.subr.bf16.mxu1 %v1410_v51 }
  0x40   : > { %1266 = vmatpush3.bf16.msra.mxu0 %v1411_v52  ;;  %1288 = vmatpush3.bf16.msra.mxu1 %v1412_v53 }
  0x41   : > { %1267 = vmatprep.subr.bf16.mxu0 %v1413_v54  ;;  %1289 = vmatprep.subr.bf16.mxu1 %v1414_v55 }
  0x44   : > { %1268 = vmatpush3.bf16.msra.mxu0 %v1415_v56  ;;  %1290 = vmatpush3.bf16.msra.mxu1 %v1416_v57 }
  0x45   : > { %1269 = vmatprep.subr.bf16.mxu0 %v1417_v58  ;;  %1291 = vmatprep.subr.bf16.mxu1 %v1418_v59 }
  0x48   : > { %1270 = vmatpush3.bf16.msra.mxu0 %v1419_v60  ;;  %1292 = vmatpush3.bf16.msra.mxu1 %v1420_v61 }
  0x49   : > { %1271 = vmatprep.subr.bf16.mxu0 %v1421_v62  ;;  %1293 = vmatprep.subr.bf16.mxu1 %v1422_v63 }
  0x4c   : > { %1272 = vmatpush3.bf16.msra.mxu0 %v1423_v0  ;;  %1294 = vmatpush3.bf16.msra.mxu1 %v1424_v1 }
 0x102   : > { %v483_v13 = vpop.f32.mrb[0].mxu0  ;;  %v526_v14 = vpop.f32.mrb[0].mxu1 }
 0x103   : > { %v1803_v15 = vadd.f32 %v483_v13, %v266_v9  ;;  %v1805_v16 = vadd.f32 %v526_v14, %v274_v10  ;;  %v485_v17 = vpop.f32.mrb[1].mxu0  ;;  %v528_v18 = vpop.f32.mrb[1].mxu1 }
 0x104   : > { %v1807_v19 = vadd.f32 %v485_v17, %v270_v11  ;;  %v1809_v20 = vadd.f32 %v528_v18, %v278_v12  ;;  %v487_v21 = vpop.f32.mrb[2].mxu0  ;;  %v530_v22 = vpop.f32.mrb[2].mxu1 }
 0x105   : > { %v543_v23 = vmul.f32 0.70710677, %v1803_v15  ;;  %v545_v24 = vmul.f32 0.70710677, %v1805_v16  ;;  %v1815_v27 = vadd.f32 %v487_v21, %v266_v9  ;;  %v489_v28 = vpop.f32.mrb[3].mxu0  ;;  %v532_v29 = vpop.f32.mrb[3].mxu1  ;;  %v1833_v46 = vadd.f32 %v530_v22, %v274_v10 }
 0x106   : > { %v544_v25 = vmul.f32 0.70710677, %v1807_v19  ;;  %v546_v26 = vmul.f32 0.70710677, %v1809_v20  ;;  %v1839_v52 = vadd.f32 %v489_v28, %v270_v11  ;;  %v1841_v53 = vadd.f32 %v532_v29, %v278_v12 }
 0x107   : > { %vm551_vm0 = vcmp.lt.f32.partialorder %v543_v23, 0.0  ;;  %vm553_vm1 = vcmp.lt.f32.partialorder %v545_v24, 0.0  ;;  %v547_v41 = vmul.f32 0.70710677, %v1815_v27  ;;  %v549_v51 = vmul.f32 0.70710677, %v1833_v46 }
 0x108   : > { %v1817_v31 = vsel %vm551_vm0, -1.0, %v1522_v30  ;;  %v1819_v32 = vsel %vm553_vm1, -1.0, %v1522_v30  ;;  %vm552_vm2 = vcmp.lt.f32.partialorder %v544_v25, 0.0  ;;  %vm554_vm3 = vcmp.lt.f32.partialorder %v546_v26, 0.0 }
 0x109   : > { %v567_v33 = vmul.f32 %v1817_v31, %v543_v23  ;;  %v569_v34 = vmul.f32 %v1819_v32, %v545_v24  ;;  %v1823_v35 = vsel %vm552_vm2, -1.0, %v1522_v30  ;;  %v1825_v36 = vsel %vm554_vm3, -1.0, %v1522_v30 }
 0x10a   : > { %v568_v37 = vmul.f32 %v1823_v35, %v544_v25  ;;  %v1829_v38 = vmul.f32 %v1825_v36, %v546_v26  ;;  %vm555_vm4 = vcmp.lt.f32.partialorder %v547_v41, 0.0  ;;  %vm557_vm5 = vcmp.lt.f32.partialorder %v549_v51, 0.0 }
 0x10b   : > { %v575_v39 = vmul.f32 0.3275911, %v567_v33  ;;  %v577_v40 = vmul.f32 0.3275911, %v569_v34  ;;  %v1835_v48 = vsel %vm555_vm4, -1.0, %v1522_v30  ;;  %v1843_v55 = vsel %vm557_vm5, -1.0, %v1522_v30 }
 0x10c   : > { %v576_v42 = vmul.f32 0.3275911, %v568_v37  ;;  %v578_v45 = vmul.f32 0.3275911, %v1829_v38  ;;  %v571_v50 = vmul.f32 %v1835_v48, %v547_v41  ;;  %v548_v56 = vmul.f32 0.70710677, %v1839_v52 }
 0x10d   : > { %v583_v43 = vadd.f32 1.0, %v575_v39  ;;  %v585_v44 = vadd.f32 1.0, %v577_v40  ;;  %v679_v57 = vsub.f32 0.0, %v567_v33  ;;  %v573_v59 = vmul.f32 %v1843_v55, %v549_v51 }
 0x10e   : > { %v584_v47 = vadd.f32 1.0, %v576_v42  ;;  %v586_v49 = vadd.f32 1.0, %v578_v45  ;;  %v579_v54 = vmul.f32 0.3275911, %v571_v50  ;;  %v681_v60 = vsub.f32 0.0, %v569_v34 }
 0x10f   : > { %1425 = vrcp.f32 %v583_v43  ;;  %vm556_vm6 = vcmp.lt.f32.partialorder %v548_v56, 0.0  ;;  %v550_v61 = vmul.f32 0.70710677, %v1841_v53  ;;  %v581_v62 = vmul.f32 0.3275911, %v573_v59 }
 0x110   : > { %1427 = vrcp.f32 %v585_v44  ;;  %v587_v58 = vadd.f32 1.0, %v579_v54  ;;  %v1848_v63 = vsel %vm556_vm6, -1.0, %v1522_v30  ;;  %v687_v1 = vmul.f32 %v679_v57, %v567_v33 }
 0x111   : > { %1429 = vrcp.f32 %v584_v47  ;;  %vm558_vm7 = vcmp.lt.f32.partialorder %v550_v61, 0.0  ;;  %v589_v2 = vadd.f32 1.0, %v581_v62  ;;  %v1853_v3 = vmul.f32 %v1848_v63, %v548_v56 }
 0x112   : > { %1431 = vrcp.f32 %v586_v49  ;;  %v689_v6 = vmul.f32 %v681_v60, %v569_v34  ;;  %v680_v7 = vsub.f32 0.0, %v568_v37  ;;  %v1858_v8 = vsel %vm558_vm7, -1.0, %v1522_v30 }
 0x113   : > { %1433 = vrcp.f32 %v587_v58  ;;  %v683_v10 = vsub.f32 0.0, %v571_v50  ;;  %v580_v11 = vmul.f32 0.3275911, %v1853_v3  ;;  %v1863_v13 = vmul.f32 %v1858_v8, %v550_v61 }
 0x114   : > { %1435 = vrcp.f32 %v589_v2  ;;  %v695_v17 = vmul.f32 1.442695, %v687_v1  ;;  %v682_v21 = vsub.f32 0.0, %v1829_v38  ;;  %v688_v25 = vmul.f32 %v680_v7, %v568_v37 }
 0x115   : > { %v588_v22 = vadd.f32 1.0, %v580_v11  ;;  %v582_v26 = vmul.f32 0.3275911, %v1863_v13  ;;  %v699_v30 = vmul.f32 1.442695, %v689_v6  ;;  %v691_v33 = vmul.f32 %v683_v10, %v571_v50 }
 0x116   : > { %v685_v43 = vsub.f32 0.0, %v573_v59  ;;  %v697_v51 = vmul.f32 1.442695, %v688_v25  ;;  %v684_v2 = vsub.f32 0.0, %v1853_v3  ;;  %v690_v11 = vmul.f32 %v682_v21, %v1829_v38 }
 0x117   : > { %1437 = vrcp.f32 %v588_v22  ;;  %v590_v44 = vadd.f32 1.0, %v582_v26  ;;  %v703_v54 = vmul.f32 1.442695, %v691_v33 }
 0x118   : > { %1439 = vpow2.f32 %v695_v17  ;;  %v693_v1 = vmul.f32 %v685_v43, %v573_v59  ;;  %v692_v38 = vmul.f32 %v684_v2, %v1853_v3 }
 0x119   : > { %v1850_v0 = vpop.eup %1425  ;;  %1441 = vpow2.f32 %v699_v30 }
 0x11a   : > { %v1855_v4 = vpop.eup %1427  ;;  %v607_v5 = vmul.f32 1.0614054, %v1850_v0  ;;  %1443 = vrcp.f32 %v590_v44  ;;  %v707_v26 = vmul.f32 1.442695, %v693_v1  ;;  %v705_v3 = vmul.f32 1.442695, %v692_v38 }
 0x11b   : > { %v609_v9 = vmul.f32 1.0614054, %v1855_v4  ;;  %v1865_v14 = vpop.eup %1429  ;;  %1445 = vpow2.f32 %v697_v51 }
 0x11c   : > { %v615_v12 = vadd.f32 -1.4531521, %v607_v5  ;;  %v608_v24 = vmul.f32 1.0614054, %v1865_v14  ;;  %v1871_v28 = vpop.eup %1431  ;;  %1447 = vpow2.f32 %v703_v54 }
 0x11d   : > { %v617_v18 = vadd.f32 -1.4531521, %v609_v9  ;;  %v610_v40 = vmul.f32 1.0614054, %v1871_v28  ;;  %v1875_v41 = vpop.eup %1433  ;;  %1449 = vpow2.f32 %v707_v26 }
 0x11e   : > { %v623_v23 = vmul.f32 %v1850_v0, %v615_v12  ;;  %v616_v39 = vadd.f32 -1.4531521, %v608_v24  ;;  %v611_v49 = vmul.f32 1.0614054, %v1875_v41  ;;  %v1882_v61 = vpop.eup %1435 }
 0x11f   : > { %v625_v29 = vmul.f32 %v1855_v4, %v617_v18  ;;  %v618_v47 = vadd.f32 -1.4531521, %v610_v40  ;;  %v613_v12 = vmul.f32 1.0614054, %v1882_v61 }
 0x120   : > { %v631_v34 = vadd.f32 1.4214138, %v623_v23  ;;  %v624_v45 = vmul.f32 %v1865_v14, %v616_v39  ;;  %v619_v60 = vadd.f32 -1.4531521, %v611_v49  ;;  %v701_v39 = vmul.f32 1.442695, %v690_v11 }
 0x121   : > { %v633_v42 = vadd.f32 1.4214138, %v625_v29  ;;  %v626_v58 = vmul.f32 %v1871_v28, %v618_v47  ;;  %v1892_v23 = vpop.eup %1437  ;;  %v621_v25 = vadd.f32 -1.4531521, %v613_v12 }
 0x122   : > { %v639_v37 = vmul.f32 %v1850_v0, %v631_v34  ;;  %v632_v57 = vadd.f32 1.4214138, %v624_v45  ;;  %v627_v9 = vmul.f32 %v1875_v41, %v619_v60  ;;  %v1440_v21 = vpop.eup %1439  ;;  %v686_v45 = vsub.f32 0.0, %v1863_v13 }
 0x123   : > { %v641_v50 = vmul.f32 %v1855_v4, %v633_v42  ;;  %v634_v7 = vadd.f32 1.4214138, %v626_v58  ;;  %v629_v40 = vmul.f32 %v1882_v61, %v621_v25  ;;  %v612_v42 = vmul.f32 1.0614054, %v1892_v23 }
 0x124   : > { %v647_v56 = vadd.f32 -0.28449672, %v639_v37  ;;  %v640_v6 = vmul.f32 %v1865_v14, %v632_v57  ;;  %v635_v22 = vadd.f32 1.4214138, %v627_v9  ;;  %1451 = vpow2.f32 %v701_v39 }
 0x125   : > { %v649_v62 = vadd.f32 -0.28449672, %v641_v50  ;;  %v642_v59 = vmul.f32 %v1871_v28, %v634_v7  ;;  %v637_v49 = vadd.f32 1.4214138, %v629_v40  ;;  %v620_v50 = vadd.f32 -1.4531521, %v612_v42 }
 0x126   : > { %v655_v5 = vmul.f32 %v1850_v0, %v647_v56  ;;  %v648_v18 = vadd.f32 -0.28449672, %v640_v6  ;;  %v643_v33 = vmul.f32 %v1875_v41, %v635_v22  ;;  %v694_v1 = vmul.f32 %v686_v45, %v1863_v13 }
 0x127   : > { %v657_v10 = vmul.f32 %v1855_v4, %v649_v62  ;;  %v650_v34 = vadd.f32 -0.28449672, %v642_v59  ;;  %v645_v57 = vmul.f32 %v1882_v61, %v637_v49  ;;  %1453 = vpow2.f32 %v705_v3 }
 0x128   : > { %v663_v17 = vadd.f32 0.2548296, %v655_v5  ;;  %v656_v30 = vmul.f32 %v1865_v14, %v648_v18  ;;  %v651_v37 = vadd.f32 -0.28449672, %v643_v33  ;;  %v709_v25 = vmul.f32 1.442695, %v694_v1 }
 0x129   : > { %v665_v24 = vadd.f32 0.2548296, %v657_v10  ;;  %v658_v56 = vmul.f32 %v1871_v28, %v650_v34  ;;  %v653_v6 = vadd.f32 -0.28449672, %v645_v57  ;;  %v541_v1 = vmul.f32 0.5, %v1833_v46 }
 0x12a   : > { %v671_v29 = vmul.f32 %v1850_v0, %v663_v17  ;;  %v1442_v0 = vpop.eup %1441  ;;  %v664_v47 = vadd.f32 0.2548296, %v656_v30  ;;  %v659_v51 = vmul.f32 %v1875_v41, %v651_v37  ;;  %1455 = vpow2.f32 %v709_v25 }
 0x12b   : > { %v673_v44 = vmul.f32 %v1855_v4, %v665_v24  ;;  %v1903_v54 = vpop.eup %1443  ;;  %v628_v4 = vmul.f32 %v1892_v23, %v620_v50  ;;  %v666_v12 = vadd.f32 0.2548296, %v658_v56  ;;  %v661_v17 = vmul.f32 %v1882_v61, %v653_v6 }
 0x12c   : > { %v711_v43 = vmul.f32 %v1440_v21, %v671_v29  ;;  %v667_v62 = vadd.f32 0.2548296, %v659_v51  ;;  %v1446_v2 = vpop.eup %1445  ;;  %v672_v5 = vmul.f32 %v1865_v14, %v664_v47  ;;  %v614_v9 = vmul.f32 1.0614054, %v1903_v54 }
 0x12d   : > { %v713_v60 = vmul.f32 %v1442_v0, %v673_v44  ;;  %v636_v7 = vadd.f32 1.4214138, %v628_v4  ;;  %v1448_v11 = vpop.eup %1447  ;;  %v669_v26 = vadd.f32 0.2548296, %v661_v17  ;;  %v540_v17 = vmul.f32 0.5, %v1839_v52 }
 0x12e   : > { %v719_v58 = vsub.f32 1.0, %v711_v43  ;;  %v675_v10 = vmul.f32 %v1875_v41, %v667_v62  ;;  %v622_v59 = vadd.f32 -1.4531521, %v614_v9  ;;  %v712_v14 = vmul.f32 %v1446_v2, %v672_v5  ;;  %v1450_v39 = vpop.eup %1449 }
 0x12f   : > { %v644_v18 = vmul.f32 %v1892_v23, %v636_v7  ;;  %v721_v13 = vsub.f32 1.0, %v713_v60  ;;  %v674_v41 = vmul.f32 %v1871_v28, %v666_v12  ;;  %v677_v38 = vmul.f32 %v1882_v61, %v669_v26  ;;  %v1452_v43 = vpop.eup %1451 }
 0x130   : > { %v727_v22 = vmul.f32 %v719_v58, %v1817_v31  ;;  %v715_v24 = vmul.f32 %v1448_v11, %v675_v10  ;;  %v630_v30 = vmul.f32 %v1903_v54, %v622_v59  ;;  %v720_v44 = vsub.f32 1.0, %v712_v14 }
 0x131   : > { %v652_v29 = vadd.f32 -0.28449672, %v644_v18  ;;  %v729_v31 = vmul.f32 %v721_v13, %v1819_v32  ;;  %v717_v37 = vmul.f32 %v1450_v39, %v677_v38  ;;  %v535_v28 = vmul.f32 0.5, %v1803_v15  ;;  %v1454_v32 = vpop.eup %1453 }
 0x132   : > { %v723_v33 = vsub.f32 1.0, %v715_v24  ;;  %v638_v34 = vadd.f32 1.4214138, %v630_v30  ;;  %v735_v40 = vadd.f32 1.0, %v727_v22  ;;  %v539_v61 = vmul.f32 0.5, %v1815_v27 }
 0x133   : > { %v660_v21 = vmul.f32 %v1892_v23, %v652_v29  ;;  %v714_v49 = vmul.f32 %v1452_v43, %v674_v41  ;;  %v725_v50 = vsub.f32 1.0, %v717_v37  ;;  %v728_v4 = vmul.f32 %v720_v44, %v1823_v35 }
 0x134   : > { %v731_v42 = vmul.f32 %v723_v33, %v1835_v48  ;;  %v646_v0 = vmul.f32 %v1903_v54, %v638_v34  ;;  %v743_v56 = vmul.f32 %v735_v40, %v535_v28  ;;  %v737_v48 = vadd.f32 1.0, %v729_v31 }
 0x135   : > { %v668_v45 = vadd.f32 0.2548296, %v660_v21  ;;  %v733_v58 = vmul.f32 %v725_v50, %v1843_v55  ;;  %v537_v15 = vmul.f32 0.5, %v1805_v16  ;;  %v722_v2 = vsub.f32 1.0, %v714_v49  ;;  %v1456_v55 = vpop.eup %1455 }
 0x136   : > { %v739_v47 = vadd.f32 1.0, %v731_v42  ;;  %v654_v3 = vadd.f32 -0.28449672, %v646_v0  ;;  %v736_v9 = vadd.f32 1.0, %v728_v4  ;;  %v536_v12 = vmul.f32 0.5, %v1807_v19 }
 0x137   : > { %v676_v51 = vmul.f32 %v1892_v23, %v668_v45  ;;  %v741_v5 = vadd.f32 1.0, %v733_v58  ;;  %v745_v7 = vmul.f32 %v737_v48, %v537_v15  ;;  %v730_v16 = vmul.f32 %v722_v2, %v1825_v36 }
 0x138   : > { %v747_v57 = vmul.f32 %v739_v47, %v539_v61  ;;  %v662_v62 = vmul.f32 %v1903_v54, %v654_v3  ;;  %v744_v22 = vmul.f32 %v736_v9, %v536_v12  ;;  %v542_v26 = vmul.f32 0.5, %v1841_v53 }
 0x139   : > { %v716_v60 = vmul.f32 %v1454_v32, %v676_v51  ;;  %v749_v10 = vmul.f32 %v741_v5, %v541_v1  ;;  %v738_v25 = vadd.f32 1.0, %v730_v16 }
 0x13a   : > { %v751_v27 = vpack.c.bf16 %v747_v57, %v743_v56  ;;  %v670_v6 = vadd.f32 0.2548296, %v662_v62 }
 0x13b   : > { %v724_v23 = vsub.f32 1.0, %v716_v60  ;;  %v753_v18 = vpack.c.bf16 %v749_v10, %v745_v7 }
 0x13c   : > { %v678_v35 = vmul.f32 %v1903_v54, %v670_v6  ;;  %v538_v54 = vmul.f32 0.5, %v1809_v20  ;;  %v1218_v20 = vld [vmem:[%s1995_s4] ss:$0 sm:$0xff] }
 0x13d   : > { %v732_v11 = vmul.f32 %v724_v23, %v1848_v63 }
 0x13e   : > { %v718_v59 = vmul.f32 %v1456_v55, %v678_v35  ;;  %v746_v52 = vmul.f32 %v738_v25, %v538_v54 }
 0x13f   : > { %v740_v46 = vadd.f32 1.0, %v732_v11 }
 0x140   : > { %v726_v24 = vsub.f32 1.0, %v718_v59 }
 0x141   : > { %v748_v13 = vmul.f32 %v740_v46, %v540_v17 }
 0x142   : > { %v734_v14 = vmul.f32 %v726_v24, %v1858_v8 }
 0x143   : > { %v752_v63 = vpack.c.bf16 %v748_v13, %v744_v22 }
 0x144   : > { %v742_v19 = vadd.f32 1.0, %v734_v14 }
 0x145   : > { %1050 = vmatprep.mubr.bf16.mxu0 %v752_v63 }
 0x146   : > { %1051 = vmatmul.mubr.bf16.vlgmr.msra.gmra.mrb[4].mxu0 %v751_v27  ;;  %v750_v36 = vmul.f32 %v742_v19, %v542_v26 }
 0x148   : > { %v754_v29 = vpack.c.bf16 %v750_v36, %v746_v52 }
 0x14a   : > { %1091 = vmatprep.mubr.bf16.mxu1 %v754_v29 }
 0x14b   : > { %1092 = vmatmul.mubr.bf16.vlgmr.msra.gmra.mrb[4].mxu1 %v753_v18 }
 0x219   : > { %v1273_v30 = vpop.f32.mrb[4].mxu0 }
 0x21a   : > { %v1274_v33 = vpop.f32.mrb[5].mxu0 }
 0x21b   : > { %v1275_v41 = vadd.f32 %v1274_v33, %v1273_v30  ;;  %v1276_v8 = vpop.f32.mrb[6].mxu0 }
 0x21c   : > { %v1277_v53 = vpop.f32.mrb[7].mxu0 }
 0x21d   : > { %v1278_v38 = vadd.f32 %v1277_v53, %v1276_v8  ;;  %v1053_v34 = vadd.f32 %v1275_v41, %v1218_v20 }
 0x21e   : > { %v1295_v21 = vpop.f32.mrb[4].mxu1 }
 0x21f   : > { %v1296_v39 = vpop.f32.mrb[5].mxu1  ;;  %v1056_v42 = vadd.f32 %v1278_v38, %v1218_v20 }
 0x220   : > { %v1297_v40 = vadd.f32 %v1296_v39, %v1295_v21  ;;  %v1298_v31 = vpop.f32.mrb[6].mxu1 }
 0x221   : > { %v1299_v43 = vpop.f32.mrb[7].mxu1 }
 0x222   : > { %v1094_v44 = vadd.f32 %v1297_v40, %v1053_v34  ;;  %v1300_v37 = vadd.f32 %v1299_v43, %v1298_v31 }
 0x224   : > { %1100 = vst [vmem:[%s218_s23] sm:$0xff] %v1094_v44  ;;  %v1097_v45 = vadd.f32 %v1300_v37, %v1056_v42 }
 0x226   : > { %1101 = vst [vmem:[%s218_s23 + $0x8] sm:$0xff] %v1097_v45 }
 0x227   : > { %1470 = shalt.err (!%p1467_p3)
}
 0x228   : > { %s1471_s12 = scalar_lea.hbm %s1948_s25, 256  ;;  %s1475_s15 = scalar_lea.hbm %s1996_s5, 512 }
 0x229   : > { %p1472_p4 = scmp.ne.s32.totalorder %s1948_s25, %s1471_s12  ;;  %p1476_p9 = scmp.lt.u32.totalorder %s1948_s25, %s1996_s5 }
 0x22a   : > { %p1477_p10 = scmp.lt.u32.totalorder %s1475_s15, %s1471_s12  ;;  %p1479_p12 = scmp.lt.u32.totalorder %s1471_s12, %s1948_s25 }
 0x22b   : > { %p1473_p7 = pnand %p1472_p4, %p1594_p5 }
 0x22c   : > { %p1478_p11 = por %p1477_p10, %p1476_p9 }
 0x22d   : > { %p1474_p8 = pneg %p1473_p7 }
 0x22e   : > { %p1480_p13 = por %p1479_p12, %p1478_p11 }
 0x230   : > { %p1481_p0 = pnand %p1480_p13, %p1474_p8 }
 0x232   : > { %1484 = shalt.err (!%p1481_p0)
}
 0x233   : > { %s1524_s23 = smov 128   ;;  %s1525_s13 = smov 8  }
 0x234   : > { %1301 = dma.vmem_to_hbm [thread:$0]  (%p1594_p5), %s1943_s26, 256, %s1948_s25, %s1950_s8, %s1524_s23, %s1524_s23, %s1525_s13  }
 0x235 PF: > { %p1307_p1 = scmp.ge.s32.totalorder %s1519_s21, 2  ;;  %s1131_s30 = sand.u32 1, %s1507_s18  }
 0x236   : > { %s1132_s6 = scalar_lea.sflag [#allocation3], %s1131_s30 }
 0x237   : > { %p1304_p2 = pnand %p1307_p1, %p1598_p6 }
 0x239   : > { %1502 = dma.done.wait (!%p1304_p2), %s1132_s6, 256  }
 0x23a   : > { %1504 = vsyncadd (!%p1304_p2), %s1132_s6, 4294967040  ;;  %p15_p3 = scmp.ge.s32.totalorder %s1581_s24, 4   ;;  %s1999_s18 = smov %s1511_s19 }
 0x23b   : > { %s2000_s19 = smov %s1515_s20  ;;  %s2001_s20 = smov %s1592_s27 }
 0x23c   : > { %s2002_s21 = smov %s1581_s24  ;;  %17 = sbr.rel (!%p15_p3) target bundleno = 3 (0x3), region = 75 }
 0x243   :  { %1137 = vsyncpa [#allocation3], 1 }
 0x244   :  { %1139 = vsyncpa [#allocation3 + $0x1], 1 }

</bundles_post_ra>
